<compile_context>
chip_gen: v7x
topology: tpu7x:2x2x1
jax: 0.10.0
libtpu: 0.0.40
codegen_flags: <defaults>
</compile_context>

<pallas_src>
import math

import jax
import jax.numpy as jnp
from jax.experimental import pallas as pl
from jax.experimental.pallas import tpu as pltpu


def _pos_enc_add_kernel(x_ref, pe_ref, o_ref):
    # lane-dense path: x_ref/pe_ref/o_ref are [ts, E]
    # fallback path:   x_ref/o_ref are [ts, B, E], pe_ref is [ts, 1, E] (broadcast)
    o_ref[...] = x_ref[...] + pe_ref[...]


def make_pos_embedding(emb_size: int, maxlen: int = 5000, dtype=jnp.float32):
    """Precompute the sinusoidal buffer exactly like the PyTorch __init__.

    Returns shape [maxlen, 1, emb_size] (register_buffer after unsqueeze(-2)).
    Assumes even emb_size, as the PyTorch code does.
    """
    den = jnp.exp(
        -jnp.arange(0, emb_size, 2, dtype=jnp.float32)
        * (math.log(10000.0) / emb_size)
    )
    pos = jnp.arange(0, maxlen, dtype=jnp.float32)[:, None]
    pe = jnp.zeros((maxlen, emb_size), jnp.float32)
    pe = pe.at[:, 0::2].set(jnp.sin(pos * den))
    pe = pe.at[:, 1::2].set(jnp.cos(pos * den))
    return pe[:, None, :].astype(dtype)  # [maxlen, 1, emb_size]


def _pick_seq_tile(S, rows_per_seq, E, itemsize, vmem_budget_bytes):
    """Largest seq tile whose double-buffered VMEM footprint fits the budget."""
    # Per seq element, one buffer set holds: x rows + out rows (rows_per_seq
    # each) + 1 pos-embedding row, all of lane width E.
    bytes_per_s = (2 * rows_per_seq + 1) * E * itemsize
    ts = max(int(vmem_budget_bytes // (2 * bytes_per_s)), 1)  # 2x: double buffered
    ts = min(ts, S)
    # Guarantee >= 2 grid steps along the (parallel) seq axis when S allows it,
    # so both v7x TensorCores get work even for short sequences.
    if ts >= S and S >= 16:
        ts = -(-S // 2)  # ceil(S / 2)
    # Round down to a sublane multiple (8); keep at least min(S, 8).
    ts = max((ts // 8) * 8, min(S, 8))
    return ts


def positional_encoding_forward(
    token_embedding,
    pos_embedding,
    *,
    seq_tile: int | None = None,
    vmem_budget_bytes: int = 12 * 1024 * 1024,
    donate_input: bool = False,
):
    """out[s, b, :] = token_embedding[s, b, :] + pos_embedding[s, 0, :]

    token_embedding: [S, B, E], pos_embedding: [maxlen, 1, E], S <= maxlen.
    """
    S, B, E = token_embedding.shape
    maxlen, one, E2 = pos_embedding.shape
    assert one == 1 and E2 == E and S <= maxlen

    dtype = token_embedding.dtype
    itemsize = jnp.dtype(dtype).itemsize
    # HBM-bound kernel: keep everything in the activation dtype (don't let an
    # f32 pe promote the add / double the bytes moved for bf16 activations).
    pe = pos_embedding.astype(dtype)

    # Layout choice:
    #  * lane-dense path: 2-D (ts, E) blocks, batch index on the grid
    #    (squeezed) -> full sublane utilization, unmasked stores. Needs runs of
    #    E*itemsize >= 512 B so the strided x DMA stays efficient.
    #  * fallback (tiny E): contiguous 3-D (ts, B, E) blocks.
    lane_dense = E * itemsize >= 512
    rows_per_seq = 1 if lane_dense else B

    ts = seq_tile if seq_tile is not None else _pick_seq_tile(
        S, rows_per_seq, E, itemsize, vmem_budget_bytes
    )
    ts = max(min(ts, S), 1)
    n_seq = pl.cdiv(S, ts)

    # Explicit scoped-VMEM limit (v5e default is only 16 MiB; v7x physical is
    # 64 MiB per TC) - actual double-buffered footprint plus headroom.
    footprint = 2 * (2 * rows_per_seq + 1) * ts * E * itemsize
    vmem_limit = int(min(max(2 * footprint, 32 * 1024 * 1024), 64 * 1024 * 1024))

    io_alias = {0: 0} if donate_input else {}

    if lane_dense:
        grid = (n_seq, B)  # batch innermost: the pe tile is reused across b
        in_specs = [
            pl.BlockSpec((ts, pl.Squeezed(), E), lambda i, b: (i, b, 0)),
            pl.BlockSpec((ts, pl.Squeezed(), E), lambda i, b: (i, 0, 0)),
        ]
        out_spec = pl.BlockSpec((ts, pl.Squeezed(), E), lambda i, b: (i, b, 0))
        dims = ("parallel", "parallel")
    else:
        grid = (n_seq,)
        in_specs = [
            pl.BlockSpec((ts, B, E), lambda i: (i, 0, 0)),
            pl.BlockSpec((ts, 1, E), lambda i: (i, 0, 0)),
        ]
        out_spec = pl.BlockSpec((ts, B, E), lambda i: (i, 0, 0))
        dims = ("parallel",)

    return pl.pallas_call(
        _pos_enc_add_kernel,
        out_shape=jax.ShapeDtypeStruct((S, B, E), dtype),
        grid=grid,
        in_specs=in_specs,
        out_specs=out_spec,
        input_output_aliases=io_alias,
        compiler_params=pltpu.CompilerParams(
            dimension_semantics=dims,
            vmem_limit_bytes=vmem_limit,
        ),
    )(token_embedding, pe)


def reference_forward(token_embedding, pos_embedding):
    S = token_embedding.shape[0]
    return token_embedding.astype(jnp.float32) + pos_embedding[:S].astype(jnp.float32)


if __name__ == "__main__":
    key = jax.random.PRNGKey(0)

    # 1) Toy shape implied by the module (seq-first [S, B, E]); E=32 is too
    #    narrow for the lane-dense path -> exercises the fallback layout.
    S, B, E, ML = 8, 2, 32, 64
    pe = make_pos_embedding(E, ML)
    x = jax.random.normal(key, (S, B, E), jnp.float32)
    out = jax.block_until_ready(positional_encoding_forward(x, pe))
    assert out.shape == (S, B, E)
    assert jnp.allclose(out, reference_forward(x, pe), atol=1e-6, rtol=1e-6), \
        "mismatch vs reference (fallback path)"

    # 2) Lane-dense path, auto tile selection -> multi-step (parallel x parallel)
    #    grid, f32.
    k2 = jax.random.PRNGKey(1)
    S2, B2, E2, ML2 = 256, 2, 128, 512
    pe2 = make_pos_embedding(E2, ML2)
    x2 = jax.random.normal(k2, (S2, B2, E2), jnp.float32)
    out2 = jax.block_until_ready(positional_encoding_forward(x2, pe2))
    assert jnp.allclose(out2, reference_forward(x2, pe2), atol=1e-6, rtol=1e-6), \
        "mismatch vs reference (lane-dense path)"

    # 3) Ragged last seq tile + bf16 end-to-end (explicit tile override).
    k3 = jax.random.PRNGKey(2)
    S3, B3, E3, ML3 = 100, 3, 256, 128
    pe3 = make_pos_embedding(E3, ML3)
    x3 = jax.random.normal(k3, (S3, B3, E3), jnp.bfloat16)
    out3 = jax.block_until_ready(
        positional_encoding_forward(x3, pe3, seq_tile=64)
    )
    assert out3.dtype == jnp.bfloat16
    assert jnp.allclose(out3.astype(jnp.float32), reference_forward(x3, pe3),
                        atol=5e-2, rtol=5e-2), "mismatch vs reference (bf16/ragged)"

    print("KERNEL_OK")
</pallas_src>

<mosaic_0001>
module attributes {stable_mosaic.version = 11 : i64} {
  func.func @_pos_enc_add_kernel(%arg0: i32, %arg1: memref<8x2x32xf32, #tpu.memory_space<vmem>>, %arg2: memref<8x1x32xf32, #tpu.memory_space<vmem>>, %arg3: memref<8x2x32xf32, #tpu.memory_space<vmem>>) attributes {dimension_semantics = [#tpu.dimension_semantics<parallel>], iteration_bounds = array<i64: 1>, scalar_prefetch = 0 : i64, scratch_operands = 0 : i64, tpu.core_type = #tpu.core_type<tc>, window_params = [{transform_indices = @transform_0, window_bounds = array<i64: 8, 2, 32>}, {transform_indices = @transform_1, window_bounds = array<i64: 8, 1, 32>}, {transform_indices = @transform_2, window_bounds = array<i64: 8, 2, 32>}]} {
    %c0 = arith.constant 0 : index
    %c0_0 = arith.constant 0 : index
    %c0_1 = arith.constant 0 : index
    %0 = vector.load %arg1[%c0, %c0_0, %c0_1] : memref<8x2x32xf32, #tpu.memory_space<vmem>>, vector<8x2x32xf32>
    %c0_2 = arith.constant 0 : index
    %c0_3 = arith.constant 0 : index
    %c0_4 = arith.constant 0 : index
    %1 = vector.load %arg2[%c0_2, %c0_3, %c0_4] : memref<8x1x32xf32, #tpu.memory_space<vmem>>, vector<8x1x32xf32>
    %2 = vector.broadcast %1 : vector<8x1x32xf32> to vector<8x2x32xf32>
    %3 = arith.addf %0, %2 : vector<8x2x32xf32>
    %c0_5 = arith.constant 0 : index
    %c0_6 = arith.constant 0 : index
    %c0_7 = arith.constant 0 : index
    %4 = vector.load %arg3[%c0_5, %c0_6, %c0_7] : memref<8x2x32xf32, #tpu.memory_space<vmem>>, vector<8x2x32xf32>
    tpu.vector_store %arg3[%c0_5, %c0_6, %c0_7], %3 {strides = array<i32>} : memref<8x2x32xf32, #tpu.memory_space<vmem>>, vector<8x2x32xf32>,
    return
  }
  func.func @transform_0(%arg0: i32) -> (i32, i32, i32) {
    %c0_i32 = arith.constant 0 : i32
    %c0_i32_0 = arith.constant 0 : i32
    %c0_i32_1 = arith.constant 0 : i32
    return %arg0, %c0_i32, %c0_i32_0 : i32, i32, i32
  }
  func.func @transform_1(%arg0: i32) -> (i32, i32, i32) {
    %c0_i32 = arith.constant 0 : i32
    %c0_i32_0 = arith.constant 0 : i32
    %c0_i32_1 = arith.constant 0 : i32
    return %arg0, %c0_i32, %c0_i32_0 : i32, i32, i32
  }
  func.func @transform_2(%arg0: i32) -> (i32, i32, i32) {
    %c0_i32 = arith.constant 0 : i32
    %c0_i32_0 = arith.constant 0 : i32
    %c0_i32_1 = arith.constant 0 : i32
    return %arg0, %c0_i32, %c0_i32_0 : i32, i32, i32
  }
}

</mosaic_0001>

<bundles_post_ra>
// kernel: tpu_custom_call.1
= control target key start
LH: loop header
LB: loop body
LE: loop exit
PB: predicated region body
PF: predicated region fallthrough
CT: control target
= control target key end

     0   :  { %vm84_vm0 = vcmask 254976   ;;  %s230_s0 = inlined_call_operand.vmem [shape: f32[8,2,32], index: 0, kind: input, shape index: {}]   ;;  %s231_s1 = inlined_call_operand.vmem [shape: f32[64,1,32], index: 1, kind: input, shape index: {}]   ;;  %s232_s2 = inlined_call_operand.hbm [shape: f32[8,2,32], index: 2, kind: output, shape index: {}]  }
   0x1   :  { %v12_v0 = vld [vmem:[%s230_s0] sm:$0x3]  ;;  %v13_v3 = vld [vmem:[%s230_s0 + $0x2] sm:$0x3]  ;;  %v14_v5 = vld [vmem:[%s230_s0 + $0x4] sm:$0x3] }
   0x2   :  { %v109_v1 = vld [vmem:[%s231_s1] ss:$0 sm:$0xff]  ;;  %v110_v4 = vld [vmem:[%s231_s1 + $0x1] ss:$0 sm:$0xff]  ;;  %v111_v7 = vld [vmem:[%s231_s1 + $0x2] ss:$0 sm:$0xff] }
   0x3   :  { %v76_v2 = vadd.f32 %v109_v1, %v12_v0  ;;  %v77_v6 = vadd.f32 %v110_v4, %v13_v3  ;;  %v15_v8 = vld [vmem:[%s230_s0 + $0x6] sm:$0x3]  ;;  %v112_v9 = vld [vmem:[%s231_s1 + $0x3] ss:$0 sm:$0xff]  ;;  %v78_v10 = vadd.f32 %v111_v7, %v14_v5  ;;  %v16_v12 = vld [vmem:[%s230_s0 + $0x8] sm:$0x3] }
   0x4   :  { %v79_v11 = vadd.f32 %v112_v9, %v15_v8  ;;  %v113_v13 = vld [vmem:[%s231_s1 + $0x4] ss:$0 sm:$0xff]  ;;  %v17_v14 = vld [vmem:[%s230_s0 + $0xa] sm:$0x3]  ;;  %v114_v16 = vld [vmem:[%s231_s1 + $0x5] ss:$0 sm:$0xff] }
   0x5   :  { %85 = vst.msk [vmem:[#allocation2] sm:$0x3] %vm84_vm0, %v76_v2  ;;  %86 = vst.msk [vmem:[#allocation2 + $0x2] sm:$0x3] %vm84_vm0, %v77_v6  ;;  %v80_v15 = vadd.f32 %v113_v13, %v16_v12  ;;  %v18_v17 = vld [vmem:[%s230_s0 + $0xc] sm:$0x3]  ;;  %v81_v19 = vadd.f32 %v114_v16, %v17_v14 }
   0x6   :  { %v115_v18 = vld [vmem:[%s231_s1 + $0x6] ss:$0 sm:$0xff]  ;;  %87 = vst.msk [vmem:[#allocation2 + $0x4] sm:$0x3] %vm84_vm0, %v78_v10  ;;  %88 = vst.msk [vmem:[#allocation2 + $0x6] sm:$0x3] %vm84_vm0, %v79_v11 }
   0x7   :  { %v82_v20 = vadd.f32 %v115_v18, %v18_v17  ;;  %v19_v21 = vld [vmem:[%s230_s0 + $0xe] sm:$0x3]  ;;  %v116_v22 = vld [vmem:[%s231_s1 + $0x7] ss:$0 sm:$0xff] }
   0x8   :  { %7 = vsyncpa [#allocation3], 0  ;;  %89 = vst.msk [vmem:[#allocation2 + $0x8] sm:$0x3] %vm84_vm0, %v80_v15  ;;  %v83_v23 = vadd.f32 %v116_v22, %v19_v21  ;;  %s144_s13 = smov [#allocation2]  }
   0x9   :  { %s98_s14 = sshll.u32 %s144_s13, 4  ;;  %90 = vst.msk [vmem:[#allocation2 + $0xa] sm:$0x3] %vm84_vm0, %v81_v19  ;;  %91 = vst.msk [vmem:[#allocation2 + $0xc] sm:$0x3] %vm84_vm0, %v82_v20  ;;  %s99_s14 = int_to_ptr.vmem [resolvable:$true] %s98_s14 }
   0xa   :  { %92 = vst.msk [vmem:[#allocation2 + $0xe] sm:$0x3] %vm84_vm0, %v83_v23  ;;  %s120_s15 = scalar_lea.vmem %s99_s14, 256  ;;  %p125_p1 = scmp.lt.s32.totalorder %s99_s14, %s99_s14 }
   0xb   :  { %p121_p0 = scmp.ne.s32.totalorder %s99_s14, %s120_s15  ;;  %p126_p2 = scmp.lt.s32.totalorder %s120_s15, %s120_s15 }
   0xd   :  { %p127_p3 = por %p126_p2, %p125_p1 }
   0xf   :  { %p128_p4 = pnand %p127_p3, %p121_p0 }
  0x11   :  { %131 = shalt.err (!%p128_p4)
}
  0x12   :  { %s132_s16 = scalar_lea.hbm %s232_s2, 256 }
  0x13   :  { %p133_p5 = scmp.ne.s32.totalorder %s232_s2, %s132_s16  ;;  %p136_p6 = scmp.lt.u32.totalorder %s132_s16, %s232_s2 }
  0x15   :  { %p138_p7 = pnand %p136_p6, %p133_p5 }
  0x17   :  { %141 = shalt.err (!%p138_p7)
}
  0x18   :  { %s145_s21 = smov 32   ;;  %s146_s22 = smov 2  }
  0x19   :  { %104 = dma.vmem_to_hbm [thread:$0]  %s99_s14, 256, %s232_s2, [#allocation3], %s145_s21, %s145_s21, %s146_s22  }
  0x1a   :  { %142 = dma.done.wait [#allocation3], 256  }
  0x1b   :  { %143 = vsyncadd [#allocation3], 4294967040 }
  0x1c   :  { %108 = vsyncpa [#allocation3], 1 }

</bundles_post_ra>
